<compile_context>
chip_gen: v5e
topology: v5e:2x2
jax: 0.10.0
libtpu: 0.0.40
codegen_flags: <defaults>
</compile_context>

<pallas_src>
import functools

import jax
import jax.numpy as jnp
from jax.experimental import pallas as pl
from jax.experimental.pallas import tpu as pltpu


def _round_up(x, m):
    return ((x + m - 1) // m) * m


# Below this many rows a single gridless, VMEM-pinned invocation is cheapest.
_SINGLE_TILE_ROWS = 1024
# Max rows per grid step (multiple of 128 lanes).  Footprint stays a few MiB.
_MAX_BATCH_TILE = 8192


def _gen_model_kernel(xT_ref, p1_ref, p2_ref, p3_ref, oT_ref, *, matmul_dtype):
    """Feature-major body.

    xT_ref: (in_dim, tile) f32 — batch on the 128-lane axis.
    p*_ref: (fan_out, fan_in + 1) f32 — weight with the bias folded in as the
            last column (PyTorch (out, in) orientation).
    oT_ref: (out_dim, tile) f32.
    """

    def layer(hT, p_ref, relu):
        k = p_ref.shape[1] - 1                                  # static fan_in
        w = p_ref[:, :k].astype(matmul_dtype)                   # (fan_out, fan_in)
        b = p_ref[:, k:]                                        # (fan_out, 1) f32
        yT = jnp.dot(w, hT.astype(matmul_dtype),
                     preferred_element_type=jnp.float32) + b    # lane-broadcast bias
        return jnp.maximum(yT, 0.0) if relu else yT

    h = layer(xT_ref[...], p1_ref, relu=True)    # de1 + ReLU (dropout p=0: identity)
    h = layer(h, p2_ref, relu=True)              # de2 + ReLU (dropout p=0: identity)
    oT_ref[...] = layer(h, p3_ref, relu=False).astype(oT_ref.dtype)   # de3


def gen_model_forward(x, params, *, matmul_dtype=jnp.bfloat16):
    """x: (batch, in_dim) float32. Returns (batch, out_dim) float32."""
    p1, p2, p3 = params
    batch, in_dim = x.shape
    out_dim = p3.shape[0]

    kernel = functools.partial(_gen_model_kernel, matmul_dtype=matmul_dtype)

    # Layout plumbing (cheap, one pass over a small array): present a
    # feature-major slab so the kernel's lane axis is the batch.
    xT = x.T                                               # (in_dim, batch)
    out_shape = jax.ShapeDtypeStruct((out_dim, batch), jnp.float32)

    if batch <= _SINGLE_TILE_ROWS:
        # Tiny problem: single invocation, everything pinned in VMEM, no grid /
        # pipeline machinery, no double buffering.
        vmem = pl.BlockSpec(memory_space=pltpu.MemorySpace.VMEM)
        outT = pl.pallas_call(
            kernel,
            out_shape=out_shape,
            in_specs=[vmem, vmem, vmem, vmem],
            out_specs=vmem,
        )(xT, p1, p2, p3)
    else:
        # Batch-tiled path: balanced tiles (>= 2 so both v7x TCs get work),
        # capped at _MAX_BATCH_TILE, lane-aligned to 128.  The final tile may be
        # ragged; Pallas masks the out-of-bounds lanes, so no jnp.pad is needed.
        num_tiles = max(2, pl.cdiv(batch, _MAX_BATCH_TILE))
        tile = _round_up(pl.cdiv(batch, num_tiles), 128)
        grid = (pl.cdiv(batch, tile),)
        outT = pl.pallas_call(
            kernel,
            out_shape=out_shape,
            grid=grid,
            in_specs=[
                pl.BlockSpec((in_dim, tile), lambda i: (0, i)),
                # Constant index_map -> weights stay resident across the grid.
                pl.BlockSpec(p1.shape, lambda i: (0, 0)),
                pl.BlockSpec(p2.shape, lambda i: (0, 0)),
                pl.BlockSpec(p3.shape, lambda i: (0, 0)),
            ],
            out_specs=pl.BlockSpec((out_dim, tile), lambda i: (0, i)),
            compiler_params=pltpu.CompilerParams(
                dimension_semantics=("parallel",)),
        )(xT, p1, p2, p3)

    return outT.T                                          # (batch, out_dim)


def init_gen_model_params(key, in_dim, out_dim, mid_shape=32, mid_shape2=32):
    """PyTorch-style nn.Linear init; each layer packed as (fan_out, fan_in+1),
    last column = bias, so y^T = p[:, :-1] @ x^T + p[:, -1:]."""

    def linear(key, fan_in, fan_out):
        kw, kb = jax.random.split(key)
        bound = 1.0 / jnp.sqrt(float(fan_in))
        w = jax.random.uniform(kw, (fan_out, fan_in), jnp.float32, -bound, bound)
        b = jax.random.uniform(kb, (fan_out, 1), jnp.float32, -bound, bound)
        return jnp.concatenate([w, b], axis=1)

    k1, k2, k3 = jax.random.split(key, 3)
    p1 = linear(k1, in_dim, mid_shape)        # de1: Linear(in_dim, 32)
    p2 = linear(k2, mid_shape, mid_shape2)    # de2: Linear(32, 32)
    p3 = linear(k3, mid_shape2, out_dim)      # de3: Linear(32, out_dim)
    return (p1, p2, p3)


def _reference_forward(x, params):
    """Pure-JAX f32 reference (HIGHEST matmul precision)."""

    def layer(h, p, relu):
        y = jnp.matmul(h, p[:, :-1].T, precision=jax.lax.Precision.HIGHEST) + p[:, -1]
        return jnp.maximum(y, 0.0) if relu else y

    p1, p2, p3 = params
    h = layer(x, p1, True)
    h = layer(h, p2, True)
    return layer(h, p3, False)


if __name__ == "__main__":
    key = jax.random.PRNGKey(0)
    in_dim, out_dim = 16, 8
    kx, kp = jax.random.split(key)
    params = init_gen_model_params(kp, in_dim, out_dim)

    # 1) Tiny batch -> gridless VMEM-pinned path; f32 matmul path for exactness.
    x = jax.random.normal(kx, (8, in_dim), jnp.float32)
    ref = _reference_forward(x, params)
    out_f32 = jax.block_until_ready(
        gen_model_forward(x, params, matmul_dtype=jnp.float32))
    assert out_f32.shape == (8, out_dim)
    assert jnp.allclose(out_f32, ref, atol=1e-5, rtol=1e-5)

    # Default bf16-operand MXU path on the same data (looser tolerance).
    out_bf16 = jax.block_until_ready(gen_model_forward(x, params))
    assert jnp.allclose(out_bf16, ref, atol=5e-2, rtol=5e-2)

    # 2) Non-aligned medium batch -> gridded path (2 balanced tiles, ragged edge).
    x2 = jax.random.normal(kx, (1040, in_dim), jnp.float32)
    ref2 = _reference_forward(x2, params)
    out2 = jax.block_until_ready(gen_model_forward(x2, params))
    assert out2.shape == (1040, out_dim)
    assert jnp.allclose(out2, ref2, atol=5e-2, rtol=5e-2)

    # 3) Larger non-multiple batch -> gridded path, validated tightly on the
    #    f32 path (checks the ragged-final-tile handling exactly).
    x3 = jax.random.normal(kx, (12345, in_dim), jnp.float32)
    ref3 = _reference_forward(x3, params)
    out3_f32 = jax.block_until_ready(
        gen_model_forward(x3, params, matmul_dtype=jnp.float32))
    assert out3_f32.shape == (12345, out_dim)
    assert jnp.allclose(out3_f32, ref3, atol=1e-4, rtol=1e-4)

    out3_bf16 = jax.block_until_ready(gen_model_forward(x3, params))
    assert jnp.allclose(out3_bf16, ref3, atol=5e-2, rtol=5e-2)

    print("KERNEL_OK")
</pallas_src>

<mosaic_0001>
module attributes {stable_mosaic.version = 11 : i64} {
  func.func @_gen_model_kernel(%arg0: memref<16x8xf32, #tpu.memory_space<vmem>>, %arg1: memref<32x17xf32, #tpu.memory_space<vmem>>, %arg2: memref<32x33xf32, #tpu.memory_space<vmem>>, %arg3: memref<8x33xf32, #tpu.memory_space<vmem>>, %arg4: memref<8x8xf32, #tpu.memory_space<vmem>>) attributes {dimension_semantics = [], scalar_prefetch = 0 : i64, scratch_operands = 0 : i64, tpu.core_type = #tpu.core_type<tc>} {
    %c0 = arith.constant 0 : index
    %c0_0 = arith.constant 0 : index
    %0 = vector.load %arg0[%c0, %c0_0] : memref<16x8xf32, #tpu.memory_space<vmem>>, vector<16x8xf32>
    %c0_1 = arith.constant 0 : index
    %c0_2 = arith.constant 0 : index
    %1 = vector.load %arg1[%c0_1, %c0_2] : memref<32x17xf32, #tpu.memory_space<vmem>>, vector<32x16xf32>
    %c0_3 = arith.constant 0 : index
    %c16 = arith.constant 16 : index
    %2 = vector.load %arg1[%c0_3, %c16] : memref<32x17xf32, #tpu.memory_space<vmem>>, vector<32x1xf32>
    %cst = arith.constant dense<0.000000e+00> : vector<32x8xf32>
    %3 = tpu.matmul %1, %0, %cst {dimension_numbers = #tpu.dot_dimension_numbers<[1], [0], [0], [1], [0, 0, 1, 1], [], []>} : vector<32x16xf32>, vector<16x8xf32>, vector<32x8xf32> -> vector<32x8xf32>
    %4 = vector.broadcast %2 : vector<32x1xf32> to vector<32x8xf32>
    %5 = arith.addf %3, %4 : vector<32x8xf32>
    %cst_4 = arith.constant 0.000000e+00 : f32
    %6 = vector.broadcast %cst_4 : f32 to vector<32x8xf32>
    %7 = arith.maximumf %5, %6 : vector<32x8xf32>
    %c0_5 = arith.constant 0 : index
    %c0_6 = arith.constant 0 : index
    %8 = vector.load %arg2[%c0_5, %c0_6] : memref<32x33xf32, #tpu.memory_space<vmem>>, vector<32x32xf32>
    %c0_7 = arith.constant 0 : index
    %c32 = arith.constant 32 : index
    %9 = vector.load %arg2[%c0_7, %c32] : memref<32x33xf32, #tpu.memory_space<vmem>>, vector<32x1xf32>
    %cst_8 = arith.constant dense<0.000000e+00> : vector<32x8xf32>
    %10 = tpu.matmul %8, %7, %cst_8 {dimension_numbers = #tpu.dot_dimension_numbers<[1], [0], [0], [1], [0, 0, 1, 1], [], []>} : vector<32x32xf32>, vector<32x8xf32>, vector<32x8xf32> -> vector<32x8xf32>
    %11 = vector.broadcast %9 : vector<32x1xf32> to vector<32x8xf32>
    %12 = arith.addf %10, %11 : vector<32x8xf32>
    %cst_9 = arith.constant 0.000000e+00 : f32
    %13 = vector.broadcast %cst_9 : f32 to vector<32x8xf32>
    %14 = arith.maximumf %12, %13 : vector<32x8xf32>
    %c0_10 = arith.constant 0 : index
    %c0_11 = arith.constant 0 : index
    %15 = vector.load %arg3[%c0_10, %c0_11] : memref<8x33xf32, #tpu.memory_space<vmem>>, vector<8x32xf32>
    %c0_12 = arith.constant 0 : index
    %c32_13 = arith.constant 32 : index
    %16 = vector.load %arg3[%c0_12, %c32_13] : memref<8x33xf32, #tpu.memory_space<vmem>>, vector<8x1xf32>
    %cst_14 = arith.constant dense<0.000000e+00> : vector<8x8xf32>
    %17 = tpu.matmul %15, %14, %cst_14 {dimension_numbers = #tpu.dot_dimension_numbers<[1], [0], [0], [1], [0, 0, 1, 1], [], []>} : vector<8x32xf32>, vector<32x8xf32>, vector<8x8xf32> -> vector<8x8xf32>
    %18 = vector.broadcast %16 : vector<8x1xf32> to vector<8x8xf32>
    %19 = arith.addf %17, %18 : vector<8x8xf32>
    %c0_15 = arith.constant 0 : index
    %c0_16 = arith.constant 0 : index
    %20 = vector.load %arg4[%c0_15, %c0_16] : memref<8x8xf32, #tpu.memory_space<vmem>>, vector<8x8xf32>
    tpu.vector_store %arg4[%c0_15, %c0_16], %19 {strides = array<i32>} : memref<8x8xf32, #tpu.memory_space<vmem>>, vector<8x8xf32>,
    return
  }
}

</mosaic_0001>

<bundles_post_ra>
// kernel: tpu_custom_call.1
= control target key start
LH: loop header
LB: loop body
LE: loop exit
PB: predicated region body
PF: predicated region fallthrough
CT: control target
= control target key end

     0   :  { %vm44_vm0 = vcmask 130048   ;;  %v251_v3 = vmov 16   ;;  %s324_s0 = inlined_call_operand.vmem [shape: f32[16,8], index: 0, kind: input, shape index: {}]   ;;  %s325_s1 = inlined_call_operand.vmem [shape: f32[32,17], index: 1, kind: input, shape index: {}]   ;;  %s326_s2 = inlined_call_operand.vmem [shape: f32[32,33], index: 2, kind: input, shape index: {}]   ;;  %s327_s3 = inlined_call_operand.vmem [shape: f32[8,33], index: 3, kind: input, shape index: {}]   ;;  %s328_s4 = inlined_call_operand.hbm [shape: f32[8,8], index: 4, kind: output, shape index: {}]  }
   0x1   :  { %v19_v0 = vld [vmem:[%s324_s0 + $0x8] sm:$0xff]  ;;  %v18_v1 = vld [vmem:[%s324_s0] sm:$0xff]  ;;  %221 = vset.pattern.permute.xlu1 %v251_v3  ;;  %v23_v5 = vld [vmem:[%s325_s1 + $0x18] sm:$0xff] }
   0x2   :  { %67 = vmatpush.msra.mxu0 %v19_v0  ;;  %v20_v2 = vld [vmem:[%s325_s1] sm:$0xff]  ;;  %v21_v4 = vld [vmem:[%s325_s1 + $0x8] sm:$0xff]  ;;  %207 = vmatpush.msra.mxu1 %v19_v0 }
   0x3   :  { %31 = vperm.xlu1 %221, %v21_v4  }
   0x4   :  { %9 = vsyncpa [#allocation3], 0  ;;  %68 = vmatpush.msra.mxu0 %v18_v1  ;;  %220 = vset.pattern.permute.xlu0 %v251_v3  ;;  %v22_v6 = vld [vmem:[%s325_s1 + $0x10] sm:$0xff]  ;;  %v89_v12 = vld [vmem:[%s326_s2 + $0x18] sm:$0xff]  ;;  %v252_v14 = vmov 32   ;;  %vm110_vm1 = vcmask 261120  }
   0x5   :  { %198 = vmatmul.msk.f32.vlgmr.msra.gmra.mxu0 %vm44_vm0, %v20_v2  ;;  %208 = vmatpush.msra.mxu1 %v18_v1  ;;  %v87_v13 = vld [vmem:[%s326_s2 + $0x8] sm:$0xff]  ;;  %v86_v16 = vld [vmem:[%s326_s2] sm:$0xff]  ;;  %v88_v18 = vld [vmem:[%s326_s2 + $0x10] sm:$0xff]  ;;  %s253_s2 = smov [#allocation2]   ;;  %s189_s11 = sshll.u32 %s328_s4, 4  ;;  %vm180_vm2 = vcmask 64512   ;;  %s190_s11 = int_to_ptr.hbm [resolvable:$true] %s189_s11 }
   0x6   :  { %201 = vmatmul.msk.f32.vlgmr.msra.gmra.mxu1 %vm44_vm0, %v23_v5  ;;  %41 = vperm.xlu0 %220, %v23_v5   ;;  %v152_v26 = vld [vmem:[%s327_s3] sm:$0xff]  ;;  %s187_s3 = sshll.u32 %s253_s2, 4  ;;  %s188_s3 = int_to_ptr.vmem [resolvable:$true] %s187_s3 }
   0x7   :  { %222 = vset.pattern.permute.xlu2 %v252_v14 }
   0x8   :  { %107 = vperm.xlu2 %222, %v89_v12  }
   0xb   :  { %26 = vperm.xlu1 %221, %v20_v2  }
   0xd   :  { %199 = vmatmul.msk.f32.gmra.mxu0 %vm44_vm0, %v21_v4 }
   0xe   :  { %36 = vperm.xlu0 %220, %v22_v6  }
  0x10   :  { %102 = vperm.xlu2 %222, %v88_v18  }
  0x13   :  { %224 = vset.pattern.permute.xlu1 %v252_v14 }
  0x14   :  { %92 = vperm.xlu1 %224, %v86_v16  }
  0x15   :  { %200 = vmatmul.msk.f32.gmra.mxu0 %vm44_vm0, %v22_v6 }
  0x16   :  { %223 = vset.pattern.permute.xlu0 %v252_v14 }
  0x17   :  { %97 = vperm.xlu0 %223, %v87_v13  }
  0x18   :  { %155 = vperm.xlu2 %222, %v152_v26  }
  0x62   :  { %v108_v29 = vpop.permute.xlu2 %107 }
  0x6a   :  { %v103_v33 = vpop.permute.xlu2 %102 }
  0x72   :  { %v156_v45 = vpop.permute.xlu2 %155 }
  0x75   :  { %v32_v15 = vpop.permute.xlu1 %31 }
  0x78   :  { %v42_v8 = vpop.permute.xlu0 %41 }
  0x7d   :  { %v27_v19 = vpop.permute.xlu1 %26 }
  0x80   :  { %v37_v20 = vpop.permute.xlu0 %36 }
  0x82   :  { %v70_v7 = vpop.f32.mrf.mxu0 }
  0x83   :  { %v79_v9 = vpop.f32.mrf.mxu1  ;;  %v71_v24 = vadd.f32 %v70_v7, %v27_v19 }
  0x84   :  { %v80_v10 = vadd.f32 %v79_v9, %v42_v8 }
  0x85   :  { %v82_v28 = vmax.f32 %v71_v24, 0.0 }
  0x86   :  { %v85_v11 = vmax.f32 %v80_v10, 0.0  ;;  %v93_v34 = vpop.permute.xlu1 %92 }
  0x88   :  { %131 = vmatpush.msrb.mxu1 %v85_v11  ;;  %209 = vmatpush.msra.mxu2 %v85_v11 }
  0x89   :  { %210 = vmatpush.msra.mxu3 %v85_v11  ;;  %v98_v31 = vpop.permute.xlu0 %97 }
  0x8a   :  { %v73_v17 = vpop.f32.mrf.mxu0 }
  0x8b   :  { %v74_v22 = vadd.f32 %v73_v17, %v32_v15 }
  0x8d   :  { %v83_v27 = vmax.f32 %v74_v22, 0.0 }
  0x92   :  { %v76_v21 = vpop.f32.mrf.mxu0 }
  0x93   :  { %v77_v23 = vadd.f32 %v76_v21, %v37_v20 }
  0x95   :  { %v84_v25 = vmax.f32 %v77_v23, 0.0 }
  0x97   :  { %132 = vmatpush.msrb.mxu1 %v84_v25  ;;  %211 = vmatpush.msra.mxu2 %v84_v25 }
  0x98   :  { %212 = vmatpush.msra.mxu3 %v84_v25 }
  0x99   :  { %133 = vmatpush.msrb.mxu1 %v83_v27  ;;  %213 = vmatpush.msra.mxu2 %v83_v27 }
  0x9a   :  { %214 = vmatpush.msra.mxu3 %v83_v27 }
  0x9b   :  { %134 = vmatpush.msrb.mxu1 %v82_v28  ;;  %215 = vmatpush.msra.mxu2 %v82_v28 }
  0x9c   :  { %216 = vmatpush.msra.mxu3 %v82_v28  ;;  %203 = vmatmul.msk.f32.vlgmr.msra.gmra.mxu2 %vm110_vm1, %v87_v13 }
  0x9d   :  { %204 = vmatmul.msk.f32.vlgmr.msra.gmra.mxu3 %vm110_vm1, %v88_v18  ;;  %202 = vmatmul.msk.f32.vlgmr.msrb.gmra.mxu1 %vm110_vm1, %v86_v16 }
  0xa5   :  { %205 = vmatmul.msk.f32.gmra.mxu3 %vm110_vm1, %v89_v12 }
 0x11a   :  { %v136_v36 = vpop.f32.mrf.mxu1 }
 0x11b   :  { %v137_v41 = vadd.f32 %v136_v36, %v93_v34 }
 0x11d   :  { %v148_v44 = vmax.f32 %v137_v41, 0.0 }
 0x11f   :  { %v139_v32 = vpop.f32.mrf.mxu2 }
 0x120   :  { %v142_v30 = vpop.f32.mrf.mxu3  ;;  %v140_v39 = vadd.f32 %v139_v32, %v98_v31 }
 0x121   :  { %v143_v37 = vadd.f32 %v142_v30, %v103_v33 }
 0x122   :  { %v149_v43 = vmax.f32 %v140_v39, 0.0 }
 0x123   :  { %v150_v42 = vmax.f32 %v143_v37, 0.0 }
 0x128   :  { %v145_v35 = vpop.f32.mrf.mxu3 }
 0x129   :  { %v146_v38 = vadd.f32 %v145_v35, %v108_v29 }
 0x12b   :  { %v151_v40 = vmax.f32 %v146_v38, 0.0 }
 0x12d   :  { %172 = vmatpush.msrb.mxu2 %v151_v40 }
 0x12f   :  { %173 = vmatpush.msrb.mxu2 %v150_v42 }
 0x131   :  { %174 = vmatpush.msrb.mxu2 %v149_v43 }
 0x133   :  { %175 = vmatpush.msrb.mxu2 %v148_v44 }
 0x134   :  { %206 = vmatmul.msk.f32.vlgmr.msrb.gmra.mxu2 %vm110_vm1, %v152_v26 }
 0x1b7   :  { %v177_v46 = vpop.f32.mrf.mxu2 }
 0x1b8   :  { %v178_v47 = vadd.f32 %v177_v46, %v156_v45 }
 0x1ba   :  { %181 = vst.msk [vmem:[#allocation2] sm:$0xff] %vm180_vm2, %v178_v47 }
 0x1bb   :  { %192 = dma.vmem_to_hbm [thread:$0]  %s188_s3, 128, %s190_s11, [#allocation3]  }
 0x1bc   :  { %249 = dma.done.wait [#allocation3], 128  }
 0x1bd   :  { %250 = vsyncadd [#allocation3], 4294967168 }
 0x1be   :  { %197 = vsyncpa [#allocation3], 1 }

</bundles_post_ra>
